<compile_context>
chip_gen: v5e
topology: v5e:2x2
jax: 0.10.0
libtpu: 0.0.40
codegen_flags: <defaults>
</compile_context>

<pallas_src>
import functools

import jax
import jax.numpy as jnp
from jax.experimental import pallas as pl
from jax.experimental.pallas import tpu as pltpu

SEQ_LEN = 8      # T
BATCH = 2        # B
HIDDEN = 32      # H (tutorial uses 500; kept small per harness guidance)

VMEM_SPEC = pl.BlockSpec(memory_space=pltpu.MemorySpace.VMEM)


# ----------------------------- in-kernel helpers ------------------------------
def _softmax_lanes(x):
    """Softmax along the last (lane) axis; divide goes to the EUP via approx recip."""
    m = jnp.max(x, axis=-1, keepdims=True)
    e = jnp.exp(x - m)
    s = jnp.sum(e, axis=-1, keepdims=True)
    return e * pl.reciprocal(s, approx=True)


def _write_rows(out_ref, sm):
    """sm: (B, T) -> out_ref (B, 1, T), one lane-dense row store per batch."""
    B = sm.shape[0]
    for b in range(B):                       # B is tiny and static
        out_ref[b] = sm[b:b + 1, :]          # (1, T) store


def _scores_bt(q, enc):
    """q: (B, H); enc: (T, B, H) loaded value.

    Returns lane-dense (B, T) scores with scores[b, t] = q[b] . enc[t, b].
    Assembled via per-T select-accumulate (leading-dim indexing only — no
    Mosaic-risky (T,B,H) reshapes, mid-dim squeezes or small transposes)."""
    T = enc.shape[0]
    B = q.shape[0]
    lane_t = jax.lax.broadcasted_iota(jnp.int32, (B, T), 1)
    scores = jnp.zeros((B, T), jnp.float32)
    for t in range(T):                                            # static unroll, VPU/XLU only
        s_t = jnp.sum(q * enc[t], axis=-1, keepdims=True)         # (B, 1)
        scores = scores + jnp.where(lane_t == t, s_t, 0.0)        # place into lane t
    return scores


# --------------------------------- kernels ------------------------------------
def attn_dot_kernel(hidden_ref, enc_ref, out_ref):
    """hidden: (1,B,H); enc: (T,B,H); out: (B,1,T)."""
    h = hidden_ref[0]                         # (B, H)
    enc = enc_ref[...]                        # (T, B, H)
    _write_rows(out_ref, _softmax_lanes(_scores_bt(h, enc)))


def attn_general_kernel(hidden_ref, enc_ref, w_ref, out_ref):
    """w: (H, H) PyTorch Linear weight used AS-IS: h.(W e + b) == (h @ W).e + const."""
    h = hidden_ref[0]                         # (B, H)
    enc = enc_ref[...]                        # (T, B, H)
    g = jnp.dot(h, w_ref[...], preferred_element_type=jnp.float32)   # (B, H), one MXU op
    _write_rows(out_ref, _softmax_lanes(_scores_bt(g, enc)))


def attn_concat_kernel(hidden_ref, enc_ref, wc1_ref, wc2_ref, bc_ref, v_ref, out_ref):
    """wc1/wc2: (H, H) halves of the concat Linear (pre-transposed to (in,out)),
    bc: (1, H) bias, v: (1, H)."""
    h = hidden_ref[0]                         # (B, H)
    enc = enc_ref[...]                        # (T, B, H)
    T, B, _ = enc_ref.shape
    # Hidden-side projection + bias: batch-fused, computed once (not per t / per b).
    hpart = jnp.dot(h, wc1_ref[...], preferred_element_type=jnp.float32) + bc_ref[...]  # (B, H)
    v = v_ref[...]                            # (1, H)

    lane_t = jax.lax.broadcasted_iota(jnp.int32, (B, T), 1)
    scores = jnp.zeros((B, T), jnp.float32)
    for t in range(T):                        # safe leading-dim indexing of enc
        epart_t = jnp.dot(enc[t], wc2_ref[...],
                          preferred_element_type=jnp.float32)         # (B, H)
        energy_t = jnp.tanh(hpart + epart_t)                          # (B, H)
        s_t = jnp.sum(v * energy_t, axis=-1, keepdims=True)           # (B, 1)
        scores = scores + jnp.where(lane_t == t, s_t, 0.0)
    _write_rows(out_ref, _softmax_lanes(scores))


# --------------------- one-time parameter preprocessing -------------------------
def prepare_attn_params(method, params, hidden_size):
    """Hoisted out of the per-step forward; call ONCE when parameters change."""
    if method == 'dot' or params is None:
        return None
    H = hidden_size
    if method == 'general':
        # Bias dropped (softmax shift invariance); W kept in PyTorch (out,in)
        # layout because the refactored kernel computes g = h @ W directly.
        return {'W': jnp.asarray(params['W_attn'], jnp.float32)}
    if method == 'concat':
        Wc = jnp.asarray(params['W_attn'], jnp.float32)        # (H, 2H) PyTorch layout
        return {
            'wc1_t': jnp.transpose(Wc[:, :H]),                 # hidden half  -> (in, out)
            'wc2_t': jnp.transpose(Wc[:, H:]),                 # encoder half -> (in, out)
            'bc': jnp.asarray(params['b_attn'], jnp.float32).reshape(1, H),
            'v': jnp.asarray(params['v'], jnp.float32).reshape(1, H),
        }
    raise ValueError(method, 'is not an appropriate attention method')


# -------------------------------- forward --------------------------------------
@functools.partial(jax.jit, static_argnums=0)
def attn_forward(method, hidden, encoder_outputs, prep=None):
    """Pallas equivalent of Attn.forward.

    hidden:          (1, B, H) float32
    encoder_outputs: (T, B, H) float32
    prep:            output of prepare_attn_params (None for 'dot')
    returns:         (B, 1, T) float32 attention weights
    """
    T, B, H = encoder_outputs.shape
    out_shape = jax.ShapeDtypeStruct((B, 1, T), jnp.float32)

    if method == 'dot':
        return pl.pallas_call(
            attn_dot_kernel, out_shape=out_shape,
            in_specs=[VMEM_SPEC] * 2, out_specs=VMEM_SPEC,
        )(hidden, encoder_outputs)
    if method == 'general':
        return pl.pallas_call(
            attn_general_kernel, out_shape=out_shape,
            in_specs=[VMEM_SPEC] * 3, out_specs=VMEM_SPEC,
        )(hidden, encoder_outputs, prep['W'])
    if method == 'concat':
        return pl.pallas_call(
            attn_concat_kernel, out_shape=out_shape,
            in_specs=[VMEM_SPEC] * 6, out_specs=VMEM_SPEC,
        )(hidden, encoder_outputs, prep['wc1_t'], prep['wc2_t'], prep['bc'], prep['v'])
    raise ValueError(method, 'is not an appropriate attention method')


# --------------------------- pure-JAX reference ---------------------------------
def attn_reference(method, hidden, encoder_outputs, params=None):
    if method == 'dot':
        energies = jnp.sum(hidden * encoder_outputs, axis=2)                    # (T, B)
    elif method == 'general':
        energy = encoder_outputs @ params['W_attn'].T + params['b_attn']        # (T, B, H)
        energies = jnp.sum(hidden * energy, axis=2)
    elif method == 'concat':
        hid = jnp.broadcast_to(hidden, encoder_outputs.shape)
        cat = jnp.concatenate([hid, encoder_outputs], axis=2)                   # (T, B, 2H)
        energy = jnp.tanh(cat @ params['W_attn'].T + params['b_attn'])
        energies = jnp.sum(params['v'] * energy, axis=2)
    energies = energies.T                                                       # (B, T)
    return jax.nn.softmax(energies, axis=1)[:, None, :]                         # (B, 1, T)


# ----------------------------------- main ----------------------------------------
if __name__ == "__main__":
    key = jax.random.PRNGKey(0)
    ks = jax.random.split(key, 7)
    T, B, H = SEQ_LEN, BATCH, HIDDEN

    hidden = jax.random.normal(ks[0], (1, B, H), jnp.float32)
    encoder_outputs = jax.random.normal(ks[1], (T, B, H), jnp.float32)

    params_general = {
        'W_attn': 0.1 * jax.random.normal(ks[2], (H, H), jnp.float32),
        'b_attn': 0.1 * jax.random.normal(ks[3], (H,), jnp.float32),
    }
    params_concat = {
        'W_attn': 0.1 * jax.random.normal(ks[4], (H, 2 * H), jnp.float32),
        'b_attn': 0.1 * jax.random.normal(ks[5], (H,), jnp.float32),
        'v': jax.random.normal(ks[6], (H,), jnp.float32),
    }

    for method, params in (('dot', None), ('general', params_general),
                           ('concat', params_concat)):
        prep = prepare_attn_params(method, params, H)            # one-time, outside jit
        out = jax.block_until_ready(attn_forward(method, hidden, encoder_outputs, prep))
        ref = attn_reference(method, hidden, encoder_outputs, params)
        assert out.shape == (B, 1, T), (method, out.shape)
        assert jnp.allclose(out, ref, atol=5e-3, rtol=5e-3), f"{method} mismatch"

    print("KERNEL_OK")
</pallas_src>

<mosaic_0001>
module attributes {stable_mosaic.version = 11 : i64} {
  func.func @attn_dot_kernel(%arg0: memref<1x2x32xf32, #tpu.memory_space<vmem>>, %arg1: memref<8x2x32xf32, #tpu.memory_space<vmem>>, %arg2: memref<2x1x8xf32, #tpu.memory_space<vmem>>) attributes {dimension_semantics = [], scalar_prefetch = 0 : i64, scratch_operands = 0 : i64, tpu.core_type = #tpu.core_type<tc>} {
    %c0 = arith.constant 0 : index
    %c0_0 = arith.constant 0 : index
    %c0_1 = arith.constant 0 : index
    %0 = vector.load %arg0[%c0, %c0_0, %c0_1] : memref<1x2x32xf32, #tpu.memory_space<vmem>>, vector<1x2x32xf32>
    %1 = vector.shape_cast %0 : vector<1x2x32xf32> to vector<2x32xf32>
    %c0_2 = arith.constant 0 : index
    %c0_3 = arith.constant 0 : index
    %c0_4 = arith.constant 0 : index
    %2 = vector.load %arg1[%c0_2, %c0_3, %c0_4] : memref<8x2x32xf32, #tpu.memory_space<vmem>>, vector<8x2x32xf32>
    %3 = tpu.iota {dimensions = array<i32: 1>} : vector<2x8xi32>
    %cst = arith.constant 0.000000e+00 : f32
    %4 = vector.broadcast %cst : f32 to vector<2x8xf32>
    %5 = vector.extract_strided_slice %2 {offsets = [0, 0, 0], sizes = [1, 2, 32], strides = [1, 1, 1]} : vector<8x2x32xf32> to vector<1x2x32xf32>
    %6 = vector.shape_cast %5 : vector<1x2x32xf32> to vector<2x32xf32>
    %7 = arith.mulf %1, %6 : vector<2x32xf32>
    %cst_5 = arith.constant dense<0.000000e+00> : vector<2xf32>
    %8 = vector.multi_reduction <add>, %7, %cst_5 [1] : vector<2x32xf32> to vector<2xf32>
    %9 = vector.shape_cast %8 : vector<2xf32> to vector<2x1xf32>
    %c0_i32 = arith.constant 0 : i32
    %10 = vector.broadcast %c0_i32 : i32 to vector<2x8xi32>
    %11 = arith.cmpi eq, %3, %10 : vector<2x8xi32>
    %cst_6 = arith.constant 0.000000e+00 : f32
    %12 = vector.shape_cast %9 : vector<2x1xf32> to vector<2x1xf32>
    %13 = vector.broadcast %12 : vector<2x1xf32> to vector<2x8xf32>
    %14 = vector.broadcast %cst_6 : f32 to vector<2x8xf32>
    %15 = arith.select %11, %13, %14 : vector<2x8xi1>, vector<2x8xf32>
    %16 = arith.addf %4, %15 : vector<2x8xf32>
    %17 = vector.extract_strided_slice %2 {offsets = [1, 0, 0], sizes = [1, 2, 32], strides = [1, 1, 1]} : vector<8x2x32xf32> to vector<1x2x32xf32>
    %18 = vector.shape_cast %17 : vector<1x2x32xf32> to vector<2x32xf32>
    %19 = arith.mulf %1, %18 : vector<2x32xf32>
    %cst_7 = arith.constant dense<0.000000e+00> : vector<2xf32>
    %20 = vector.multi_reduction <add>, %19, %cst_7 [1] : vector<2x32xf32> to vector<2xf32>
    %21 = vector.shape_cast %20 : vector<2xf32> to vector<2x1xf32>
    %c1_i32 = arith.constant 1 : i32
    %22 = vector.broadcast %c1_i32 : i32 to vector<2x8xi32>
    %23 = arith.cmpi eq, %3, %22 : vector<2x8xi32>
    %cst_8 = arith.constant 0.000000e+00 : f32
    %24 = vector.shape_cast %21 : vector<2x1xf32> to vector<2x1xf32>
    %25 = vector.broadcast %24 : vector<2x1xf32> to vector<2x8xf32>
    %26 = vector.broadcast %cst_8 : f32 to vector<2x8xf32>
    %27 = arith.select %23, %25, %26 : vector<2x8xi1>, vector<2x8xf32>
    %28 = arith.addf %16, %27 : vector<2x8xf32>
    %29 = vector.extract_strided_slice %2 {offsets = [2, 0, 0], sizes = [1, 2, 32], strides = [1, 1, 1]} : vector<8x2x32xf32> to vector<1x2x32xf32>
    %30 = vector.shape_cast %29 : vector<1x2x32xf32> to vector<2x32xf32>
    %31 = arith.mulf %1, %30 : vector<2x32xf32>
    %cst_9 = arith.constant dense<0.000000e+00> : vector<2xf32>
    %32 = vector.multi_reduction <add>, %31, %cst_9 [1] : vector<2x32xf32> to vector<2xf32>
    %33 = vector.shape_cast %32 : vector<2xf32> to vector<2x1xf32>
    %c2_i32 = arith.constant 2 : i32
    %34 = vector.broadcast %c2_i32 : i32 to vector<2x8xi32>
    %35 = arith.cmpi eq, %3, %34 : vector<2x8xi32>
    %cst_10 = arith.constant 0.000000e+00 : f32
    %36 = vector.shape_cast %33 : vector<2x1xf32> to vector<2x1xf32>
    %37 = vector.broadcast %36 : vector<2x1xf32> to vector<2x8xf32>
    %38 = vector.broadcast %cst_10 : f32 to vector<2x8xf32>
    %39 = arith.select %35, %37, %38 : vector<2x8xi1>, vector<2x8xf32>
    %40 = arith.addf %28, %39 : vector<2x8xf32>
    %41 = vector.extract_strided_slice %2 {offsets = [3, 0, 0], sizes = [1, 2, 32], strides = [1, 1, 1]} : vector<8x2x32xf32> to vector<1x2x32xf32>
    %42 = vector.shape_cast %41 : vector<1x2x32xf32> to vector<2x32xf32>
    %43 = arith.mulf %1, %42 : vector<2x32xf32>
    %cst_11 = arith.constant dense<0.000000e+00> : vector<2xf32>
    %44 = vector.multi_reduction <add>, %43, %cst_11 [1] : vector<2x32xf32> to vector<2xf32>
    %45 = vector.shape_cast %44 : vector<2xf32> to vector<2x1xf32>
    %c3_i32 = arith.constant 3 : i32
    %46 = vector.broadcast %c3_i32 : i32 to vector<2x8xi32>
    %47 = arith.cmpi eq, %3, %46 : vector<2x8xi32>
    %cst_12 = arith.constant 0.000000e+00 : f32
    %48 = vector.shape_cast %45 : vector<2x1xf32> to vector<2x1xf32>
    %49 = vector.broadcast %48 : vector<2x1xf32> to vector<2x8xf32>
    %50 = vector.broadcast %cst_12 : f32 to vector<2x8xf32>
    %51 = arith.select %47, %49, %50 : vector<2x8xi1>, vector<2x8xf32>
    %52 = arith.addf %40, %51 : vector<2x8xf32>
    %53 = vector.extract_strided_slice %2 {offsets = [4, 0, 0], sizes = [1, 2, 32], strides = [1, 1, 1]} : vector<8x2x32xf32> to vector<1x2x32xf32>
    %54 = vector.shape_cast %53 : vector<1x2x32xf32> to vector<2x32xf32>
    %55 = arith.mulf %1, %54 : vector<2x32xf32>
    %cst_13 = arith.constant dense<0.000000e+00> : vector<2xf32>
    %56 = vector.multi_reduction <add>, %55, %cst_13 [1] : vector<2x32xf32> to vector<2xf32>
    %57 = vector.shape_cast %56 : vector<2xf32> to vector<2x1xf32>
    %c4_i32 = arith.constant 4 : i32
    %58 = vector.broadcast %c4_i32 : i32 to vector<2x8xi32>
    %59 = arith.cmpi eq, %3, %58 : vector<2x8xi32>
    %cst_14 = arith.constant 0.000000e+00 : f32
    %60 = vector.shape_cast %57 : vector<2x1xf32> to vector<2x1xf32>
    %61 = vector.broadcast %60 : vector<2x1xf32> to vector<2x8xf32>
    %62 = vector.broadcast %cst_14 : f32 to vector<2x8xf32>
    %63 = arith.select %59, %61, %62 : vector<2x8xi1>, vector<2x8xf32>
    %64 = arith.addf %52, %63 : vector<2x8xf32>
    %65 = vector.extract_strided_slice %2 {offsets = [5, 0, 0], sizes = [1, 2, 32], strides = [1, 1, 1]} : vector<8x2x32xf32> to vector<1x2x32xf32>
    %66 = vector.shape_cast %65 : vector<1x2x32xf32> to vector<2x32xf32>
    %67 = arith.mulf %1, %66 : vector<2x32xf32>
    %cst_15 = arith.constant dense<0.000000e+00> : vector<2xf32>
    %68 = vector.multi_reduction <add>, %67, %cst_15 [1] : vector<2x32xf32> to vector<2xf32>
    %69 = vector.shape_cast %68 : vector<2xf32> to vector<2x1xf32>
    %c5_i32 = arith.constant 5 : i32
    %70 = vector.broadcast %c5_i32 : i32 to vector<2x8xi32>
    %71 = arith.cmpi eq, %3, %70 : vector<2x8xi32>
    %cst_16 = arith.constant 0.000000e+00 : f32
    %72 = vector.shape_cast %69 : vector<2x1xf32> to vector<2x1xf32>
    %73 = vector.broadcast %72 : vector<2x1xf32> to vector<2x8xf32>
    %74 = vector.broadcast %cst_16 : f32 to vector<2x8xf32>
    %75 = arith.select %71, %73, %74 : vector<2x8xi1>, vector<2x8xf32>
    %76 = arith.addf %64, %75 : vector<2x8xf32>
    %77 = vector.extract_strided_slice %2 {offsets = [6, 0, 0], sizes = [1, 2, 32], strides = [1, 1, 1]} : vector<8x2x32xf32> to vector<1x2x32xf32>
    %78 = vector.shape_cast %77 : vector<1x2x32xf32> to vector<2x32xf32>
    %79 = arith.mulf %1, %78 : vector<2x32xf32>
    %cst_17 = arith.constant dense<0.000000e+00> : vector<2xf32>
    %80 = vector.multi_reduction <add>, %79, %cst_17 [1] : vector<2x32xf32> to vector<2xf32>
    %81 = vector.shape_cast %80 : vector<2xf32> to vector<2x1xf32>
    %c6_i32 = arith.constant 6 : i32
    %82 = vector.broadcast %c6_i32 : i32 to vector<2x8xi32>
    %83 = arith.cmpi eq, %3, %82 : vector<2x8xi32>
    %cst_18 = arith.constant 0.000000e+00 : f32
    %84 = vector.shape_cast %81 : vector<2x1xf32> to vector<2x1xf32>
    %85 = vector.broadcast %84 : vector<2x1xf32> to vector<2x8xf32>
    %86 = vector.broadcast %cst_18 : f32 to vector<2x8xf32>
    %87 = arith.select %83, %85, %86 : vector<2x8xi1>, vector<2x8xf32>
    %88 = arith.addf %76, %87 : vector<2x8xf32>
    %89 = vector.extract_strided_slice %2 {offsets = [7, 0, 0], sizes = [1, 2, 32], strides = [1, 1, 1]} : vector<8x2x32xf32> to vector<1x2x32xf32>
    %90 = vector.shape_cast %89 : vector<1x2x32xf32> to vector<2x32xf32>
    %91 = arith.mulf %1, %90 : vector<2x32xf32>
    %cst_19 = arith.constant dense<0.000000e+00> : vector<2xf32>
    %92 = vector.multi_reduction <add>, %91, %cst_19 [1] : vector<2x32xf32> to vector<2xf32>
    %93 = vector.shape_cast %92 : vector<2xf32> to vector<2x1xf32>
    %c7_i32 = arith.constant 7 : i32
    %94 = vector.broadcast %c7_i32 : i32 to vector<2x8xi32>
    %95 = arith.cmpi eq, %3, %94 : vector<2x8xi32>
    %cst_20 = arith.constant 0.000000e+00 : f32
    %96 = vector.shape_cast %93 : vector<2x1xf32> to vector<2x1xf32>
    %97 = vector.broadcast %96 : vector<2x1xf32> to vector<2x8xf32>
    %98 = vector.broadcast %cst_20 : f32 to vector<2x8xf32>
    %99 = arith.select %95, %97, %98 : vector<2x8xi1>, vector<2x8xf32>
    %100 = arith.addf %88, %99 : vector<2x8xf32>
    %cst_21 = arith.constant dense<0xFF800000> : vector<2xf32>
    %101 = vector.multi_reduction <maximumf>, %100, %cst_21 [1] : vector<2x8xf32> to vector<2xf32>
    %102 = vector.shape_cast %101 : vector<2xf32> to vector<2x1xf32>
    %103 = vector.broadcast %102 : vector<2x1xf32> to vector<2x8xf32>
    %104 = arith.subf %100, %103 : vector<2x8xf32>
    %105 = math.exp %104 : vector<2x8xf32>
    %cst_22 = arith.constant dense<0.000000e+00> : vector<2xf32>
    %106 = vector.multi_reduction <add>, %105, %cst_22 [1] : vector<2x8xf32> to vector<2xf32>
    %107 = vector.shape_cast %106 : vector<2xf32> to vector<2x1xf32>
    %108 = tpu.reciprocal %107 {approx = true} : vector<2x1xf32> -> vector<2x1xf32>
    %109 = vector.broadcast %108 : vector<2x1xf32> to vector<2x8xf32>
    %110 = arith.mulf %105, %109 : vector<2x8xf32>
    %111 = vector.extract_strided_slice %110 {offsets = [0, 0], sizes = [1, 8], strides = [1, 1]} : vector<2x8xf32> to vector<1x8xf32>
    %c0_23 = arith.constant 0 : index
    %c0_24 = arith.constant 0 : index
    %c0_25 = arith.constant 0 : index
    %112 = vector.load %arg2[%c0_23, %c0_24, %c0_25] : memref<2x1x8xf32, #tpu.memory_space<vmem>>, vector<1x1x8xf32>
    %113 = vector.shape_cast %112 : vector<1x1x8xf32> to vector<1x8xf32>
    %114 = vector.shape_cast %111 : vector<1x8xf32> to vector<1x1x8xf32>
    tpu.vector_store %arg2[%c0_23, %c0_24, %c0_25], %114 {strides = array<i32>} : memref<2x1x8xf32, #tpu.memory_space<vmem>>, vector<1x1x8xf32>,
    %115 = vector.extract_strided_slice %110 {offsets = [1, 0], sizes = [1, 8], strides = [1, 1]} : vector<2x8xf32> to vector<1x8xf32>
    %c1 = arith.constant 1 : index
    %c0_26 = arith.constant 0 : index
    %c0_27 = arith.constant 0 : index
    %116 = vector.load %arg2[%c1, %c0_26, %c0_27] : memref<2x1x8xf32, #tpu.memory_space<vmem>>, vector<1x1x8xf32>
    %117 = vector.shape_cast %116 : vector<1x1x8xf32> to vector<1x8xf32>
    %118 = vector.shape_cast %115 : vector<1x8xf32> to vector<1x1x8xf32>
    tpu.vector_store %arg2[%c1, %c0_26, %c0_27], %118 {strides = array<i32>} : memref<2x1x8xf32, #tpu.memory_space<vmem>>, vector<1x1x8xf32>,
    return
  }
}

</mosaic_0001>

<bundles_post_ra>
// kernel: attn_forward.1
= control target key start
LH: loop header
LB: loop body
LE: loop exit
PB: predicated region body
PF: predicated region fallthrough
CT: control target
= control target key end

     0   :  { %7 = vsyncpa [#allocation3], 0  ;;  %s275_s0 = inlined_call_operand.hbm [shape: f32[1,2,32], index: 0, kind: input, shape index: {}]   ;;  %s276_s1 = inlined_call_operand.hbm [shape: f32[8,2,32], index: 1, kind: input, shape index: {}]   ;;  %s277_s2 = inlined_call_operand.hbm [shape: f32[2,1,8], index: 2, kind: output, shape index: {}]  }
   0x1   :  { %8 = vsyncpa [#allocation6], 0 }
   0x2   :  { %9 = vsyncpa [#allocation4], 0  ;;  %s15_s11 = sshll.u32 %s275_s0, 4  ;;  %s236_s12 = smov [#allocation2]   ;;  %s16_s11 = int_to_ptr.hbm [resolvable:$true] %s15_s11 }
   0x3   :  { %s17_s13 = sshll.u32 %s236_s12, 4  ;;  %s25_s16 = sshll.u32 %s276_s1, 4  ;;  %s18_s13 = int_to_ptr.vmem [resolvable:$true] %s17_s13  ;;  %s26_s16 = int_to_ptr.hbm [resolvable:$true] %s25_s16 }
   0x4   :  { %20 = dma.hbm_to_vmem [thread:$0]  %s16_s11, 32, %s18_s13, [#allocation3]  }
   0x5   :  { %s237_s17 = smov [#allocation5]   ;;  %s238_s19 = smov 32  }
   0x6   :  { %s27_s18 = sshll.u32 %s237_s17, 4  ;;  %s239_s20 = smov 2   ;;  %s28_s18 = int_to_ptr.vmem [resolvable:$true] %s27_s18 }
   0x7   :  { %33 = dma.hbm_to_vmem [thread:$0]  %s26_s16, 256, %s28_s18, [#allocation6], %s238_s19, %s238_s19, %s239_s20  }
   0x8   :  { %230 = dma.done.wait [#allocation3], 32  }
   0x9   :  { %231 = vsyncadd [#allocation3], 4294967264 }
   0xa   :  { %232 = dma.done.wait [#allocation6], 256  }
   0xb   :  { %233 = vsyncadd [#allocation6], 4294967040  ;;  %vm54_vm0 = vcmask 254976   ;;  %v42_v0 = vld [vmem:[#allocation2] sm:$0x3]  ;;  %v51_v25 = vlaneseq  ;;  %vm110_vm9 = vcmask 58368  }
   0xc   :  { %v43_v1 = vld [vmem:[#allocation5] sm:$0x3]  ;;  %v45_v2 = vld [vmem:[#allocation5 + $0x4] sm:$0x3]  ;;  %v47_v5 = vld [vmem:[#allocation5 + $0x8] sm:$0x3] }
   0xd   :  { %v53_v3 = vmul.f32 %v43_v1, %v42_v0  ;;  %v68_v4 = vmul.f32 %v45_v2, %v42_v0  ;;  %v82_v6 = vmul.f32 %v47_v5, %v42_v0  ;;  %v44_v7 = vld [vmem:[#allocation5 + $0x2] sm:$0x3]  ;;  %v46_v8 = vld [vmem:[#allocation5 + $0x6] sm:$0x3]  ;;  %v48_v11 = vld [vmem:[#allocation5 + $0xa] sm:$0x3] }
   0xe   :  { %v61_v13 = vmul.f32 %v44_v7, %v42_v0  ;;  %v75_v14 = vmul.f32 %v46_v8, %v42_v0  ;;  %v89_v15 = vmul.f32 %v48_v11, %v42_v0  ;;  %v49_v19 = vld [vmem:[#allocation5 + $0xc] sm:$0x3]  ;;  %v50_v20 = vld [vmem:[#allocation5 + $0xe] sm:$0x3]  ;;  %v52_v28 = vand.u32 127, %v51_v25  ;;  %s240_s0 = smov [#allocation7]  }
   0xf   :  { %v55_v9 = vsel %vm54_vm0, %v53_v3, 0.0  ;;  %v69_v10 = vsel %vm54_vm0, %v68_v4, 0.0  ;;  %v83_v12 = vsel %vm54_vm0, %v82_v6, 0.0  ;;  %v96_v21 = vmul.f32 %v49_v19, %v42_v0  ;;  %s131_s1 = sshll.u32 %s240_s0, 4  ;;  %s133_s23 = sshll.u32 %s277_s2, 4  ;;  %s132_s1 = int_to_ptr.vmem [resolvable:$true] %s131_s1  ;;  %s134_s23 = int_to_ptr.hbm [resolvable:$true] %s133_s23 }
  0x10   :  { %56 = vadd.xlane.f32.xlu0 %v55_v9  ;;  %70 = vadd.xlane.f32.xlu1 %v69_v10  ;;  %v62_v16 = vsel %vm54_vm0, %v61_v13, 0.0  ;;  %v76_v17 = vsel %vm54_vm0, %v75_v14, 0.0  ;;  %v90_v18 = vsel %vm54_vm0, %v89_v15, 0.0  ;;  %v103_v22 = vmul.f32 %v50_v20, %v42_v0  ;;  %s241_s24 = smov 16   ;;  %s242_s25 = smov 1  }
  0x11   :  { %84 = vadd.xlane.f32.xlu2 %v83_v12  ;;  %v97_v23 = vsel %vm54_vm0, %v96_v21, 0.0  ;;  %vm58_vm1 = vcmp.eq.s32.totalorder %v52_v28, 0  ;;  %vm65_vm2 = vcmp.eq.s32.totalorder %v52_v28, 1  ;;  %vm72_vm3 = vcmp.eq.s32.totalorder %v52_v28, 2 }
  0x12   :  { %v104_v24 = vsel %vm54_vm0, %v103_v22, 0.0  ;;  %vm79_vm4 = vcmp.eq.s32.totalorder %v52_v28, 3  ;;  %vm86_vm5 = vcmp.eq.s32.totalorder %v52_v28, 4  ;;  %vm93_vm6 = vcmp.eq.s32.totalorder %v52_v28, 5 }
  0x13   :  { %vm100_vm7 = vcmp.eq.s32.totalorder %v52_v28, 6  ;;  %vm107_vm8 = vcmp.eq.s32.totalorder %v52_v28, 7  ;;  %vm122_vm10 = vcmask 57344   ;;  %vm125_vm11 = vcmask 58369  }
  0x18   :  { %63 = vadd.xlane.f32.xlu0 %v62_v16  ;;  %77 = vadd.xlane.f32.xlu1 %v76_v17 }
  0x19   :  { %91 = vadd.xlane.f32.xlu2 %v90_v18 }
  0x20   :  { %98 = vadd.xlane.f32.xlu0 %v97_v23  ;;  %105 = vadd.xlane.f32.xlu1 %v104_v24 }
  0x83   :  { %v57_v26 = vpop.xlane.xlu0 %56  ;;  %v71_v27 = vpop.xlane.xlu1 %70 }
  0x84   :  { %v85_v29 = vpop.xlane.xlu2 %84  ;;  %v59_v32 = vsel %vm58_vm1, %v57_v26, 0.0  ;;  %v73_v35 = vsel %vm72_vm3, %v71_v27, 0.0 }
  0x85   :  { %v87_v40 = vsel %vm86_vm5, %v85_v29, 0.0 }
  0x8b   :  { %v64_v30 = vpop.xlane.xlu0 %63  ;;  %v78_v31 = vpop.xlane.xlu1 %77 }
  0x8c   :  { %v66_v33 = vsel %vm65_vm2, %v64_v30, 0.0  ;;  %v80_v36 = vsel %vm79_vm4, %v78_v31, 0.0  ;;  %v92_v38 = vpop.xlane.xlu2 %91 }
  0x8d   :  { %v67_v34 = vadd.f32 %v66_v33, %v59_v32  ;;  %v94_v41 = vsel %vm93_vm6, %v92_v38, 0.0 }
  0x8f   :  { %v74_v37 = vadd.f32 %v73_v35, %v67_v34 }
  0x91   :  { %v81_v39 = vadd.f32 %v80_v36, %v74_v37 }
  0x93   :  { %v88_v42 = vadd.f32 %v87_v40, %v81_v39  ;;  %v99_v43 = vpop.xlane.xlu0 %98  ;;  %v106_v44 = vpop.xlane.xlu1 %105 }
  0x94   :  { %v101_v45 = vsel %vm100_vm7, %v99_v43, 0.0  ;;  %v108_v47 = vsel %vm107_vm8, %v106_v44, 0.0 }
  0x95   :  { %v95_v46 = vadd.f32 %v94_v41, %v88_v42 }
  0x97   :  { %v102_v48 = vadd.f32 %v101_v45, %v95_v46 }
  0x99   :  { %v109_v49 = vadd.f32 %v108_v47, %v102_v48 }
  0x9b   :  { %v111_v50 = vsel %vm110_vm9, %v109_v49, -inf }
  0x9c   :  { %112 = vmax.xlane.f32.xlu2 %v111_v50 }
 0x10f   :  { %v113_v51 = vpop.xlane.xlu2 %112 }
 0x110   :  { %v114_v52 = vsub.f32 %v109_v49, %v113_v51 }
 0x112   :  { %v115_v53 = vmul.f32 1.442695, %v114_v52 }
 0x114   :  { %154 = vpow2.f32 %v115_v53 }
 0x11a   :  { %v155_v54 = vpop.eup %154 }
 0x11b   :  { %v117_v55 = vsel %vm110_vm9, %v155_v54, 0.0 }
 0x11c   :  { %118 = vadd.xlane.f32.xlu0 %v117_v55 }
 0x18f   :  { %v119_v56 = vpop.xlane.xlu0 %118 }
 0x190   :  { %156 = vrcp.f32 %v119_v56 }
 0x196   :  { %v157_v57 = vpop.eup %156 }
 0x197   :  { %v121_v58 = vmul.f32 %v157_v57, %v155_v54 }
 0x199   :  { %123 = vst.msk [vmem:[#allocation7] sm:$0x1] %vm122_vm10, %v121_v58 }
 0x19a   :  { %126 = vst.msk [vmem:[#allocation7] sm:$0x2] %vm125_vm11, %v121_v58 }
 0x19b   :  { %139 = dma.vmem_to_hbm [thread:$0]  %s132_s1, 32, %s134_s23, [#allocation4], %s241_s24, %s241_s24, %s242_s25  }
 0x19c   :  { %234 = dma.done.wait [#allocation4], 32  }
 0x19d   :  { %235 = vsyncadd [#allocation4], 4294967264 }
 0x19e   :  { %144 = vsyncpa [#allocation3], 1 }
 0x19f   :  { %145 = vsyncpa [#allocation6], 1 }
 0x1a0   :  { %146 = vsyncpa [#allocation4], 1 }

</bundles_post_ra>
